<compile_context>
chip_gen: v5e
topology: v5e:2x2
jax: 0.10.0
libtpu: 0.0.40
codegen_flags: <defaults>
</compile_context>

<pallas_src>
import functools

import jax
import jax.numpy as jnp
from jax import lax
from jax.experimental import pallas as pl
from jax.experimental.pallas import tpu as pltpu


def _round_up(x: int, m: int) -> int:
    return (x + m - 1) // m * m


def pool_avg_kernel(lim_ref, x_ref, n_ref, w_ref, b_ref, o_ref, acc_ref, *, t_total):
    # lim_ref : SMEM (grid_b,) i32  -- #time tiles actually needed per batch tile
    # x_ref   : VMEM (tb, tt, D)    -- streamed input tile (true D, no padding)
    # n_ref   : VMEM (tb, 1) f32    -- n_wins per row
    # w_ref   : VMEM (D, Op) f32    -- resident Linear weight (transposed, O padded)
    # b_ref   : VMEM (1, Op) f32    -- resident bias
    # o_ref   : VMEM (tb, Op)       -- output tile
    # acc_ref : VMEM (tb, D) f32    -- masked-sum accumulator across time tiles
    tb, tt, _ = x_ref.shape
    i = pl.program_id(0)
    j = pl.program_id(1)

    @pl.when(j == 0)
    def _init():
        acc_ref[...] = jnp.zeros_like(acc_ref)

    # Fully-masked time tiles are skipped entirely (their DMA is also clamped
    # away in the x index_map).
    @pl.when(j < lim_ref[i])
    def _accumulate():
        x = x_ref[...]                                            # (tb, tt, D)
        # Truncating cast matches the PyTorch `.to(torch.long)` mask build;
        # clamping to T also zeroes the ragged time tail (no T padding in HBM).
        n = jnp.minimum(n_ref[...].astype(jnp.int32), t_total)    # (tb, 1)
        # iota directly in (tb, tt, 1) layout: broadcast over D is a lane splat.
        t_ids = j * tt + lax.broadcasted_iota(jnp.int32, (tb, tt, 1), 1)
        mask = t_ids < n[:, :, None]                              # (tb, tt, 1)
        xm = jnp.where(mask, x, jnp.zeros_like(x))                # select in input dtype
        acc_ref[...] += jnp.sum(xm.astype(jnp.float32), axis=1)   # f32 accumulate

    @pl.when(j == pl.num_programs(1) - 1)
    def _finalize():
        # Deferred 1/n: one (tb, D) divide; n == 0 gives 0/0 = NaN like PyTorch.
        avg = acc_ref[...] / n_ref[...]                           # (tb, D) f32
        out = jnp.dot(avg, w_ref[...],
                      preferred_element_type=jnp.float32) + b_ref[...]
        o_ref[...] = out.astype(o_ref.dtype)


def pool_avg(x, n_wins, weight_t, bias, *, tb=None, tt=None,
             target_x_tile_bytes=4 << 20):
    """x: (B, T, D); n_wins: (B,); weight_t: (D, O) (Linear weight, transposed); bias: (O,)."""
    B, T, D = x.shape
    O = weight_t.shape[1]
    itemsize = jnp.dtype(x.dtype).itemsize

    Op = _round_up(O, 128)                    # lane-dense weight/bias/output

    # ---- batch tile: multiple of 8 OR the full batch dim (both legal) -------
    if tb is None:
        if B < 16:
            tb = B                                    # single tile, no padding
        elif B <= 256:
            tb = _round_up(-(-B // 2), 8)             # >=2 tiles for v7x megacore
        else:
            tb = 128
    tb = min(tb, B)
    grid_b = pl.cdiv(B, tb)

    # ---- time tile: ~4 MiB per x buffer (per-step overhead vs roofline knee) -
    if tt is None:
        tt_fit = max(8, (target_x_tile_bytes // max(1, tb * D * itemsize)) // 8 * 8)
        tt = T if tt_fit >= T else int(tt_fit)
    tt = min(tt, T)
    grid_t = pl.cdiv(T, tt)

    # ---- small params (the only arrays we pad — x is passed through as-is) ---
    n2 = n_wins.astype(jnp.float32).reshape(B, 1)
    wp = jnp.pad(weight_t.astype(jnp.float32), ((0, 0), (0, Op - O)))
    bp = jnp.pad(bias.astype(jnp.float32).reshape(1, O), ((0, 0), (0, Op - O)))

    # Per-batch-tile number of time tiles actually needed (tiny (B,)-sized work).
    n_flat = jnp.pad(n_wins.astype(jnp.float32), (0, grid_b * tb - B))
    tiles_per_row = jnp.ceil(jnp.minimum(n_flat, float(T)) / float(tt)).astype(jnp.int32)
    tile_limits = jnp.minimum(jnp.max(tiles_per_row.reshape(grid_b, tb), axis=1),
                              grid_t).astype(jnp.int32)

    # ---- VMEM budget (no double-counting of the double-buffer factors) ------
    out_itemsize = jnp.dtype(x.dtype).itemsize
    vmem_bytes = (2 * tb * tt * D * itemsize       # x (double-buffered)
                  + 2 * tb * 4                     # n_wins
                  + 2 * (D * Op + Op) * 4          # weight + bias buffers
                  + 2 * tb * Op * out_itemsize     # output
                  + tb * D * 4)                    # f32 accumulator scratch
    vmem_limit = int(min(max(vmem_bytes + (2 << 20), 8 << 20), 60 << 20))

    cost = pl.CostEstimate(
        flops=2 * B * T * D + 2 * B * D * Op,
        bytes_accessed=B * T * D * itemsize + B * Op * out_itemsize
                       + (D * Op + Op) * 4 + B * 4,
        transcendentals=0,
    )

    kernel = functools.partial(pool_avg_kernel, t_total=T)

    out = pl.pallas_call(
        kernel,
        out_shape=jax.ShapeDtypeStruct((B, Op), x.dtype),
        grid_spec=pltpu.PrefetchScalarGridSpec(
            num_scalar_prefetch=1,
            grid=(grid_b, grid_t),
            in_specs=[
                # x: streamed time tiles; past each batch tile's limit the block
                # index is clamped (unchanged index => the DMA is skipped).
                pl.BlockSpec(
                    (tb, tt, D),
                    lambda i, j, lim: (i, jnp.minimum(j, jnp.maximum(lim[i] - 1, 0)), 0)),
                pl.BlockSpec((tb, 1), lambda i, j, lim: (i, 0)),    # n_wins
                pl.BlockSpec((D, Op), lambda i, j, lim: (0, 0)),    # weight (resident)
                pl.BlockSpec((1, Op), lambda i, j, lim: (0, 0)),    # bias (resident)
            ],
            out_specs=pl.BlockSpec((tb, Op), lambda i, j, lim: (i, 0)),
            scratch_shapes=[pltpu.VMEM((tb, D), jnp.float32)],
        ),
        compiler_params=pltpu.CompilerParams(
            dimension_semantics=("parallel", "arbitrary"),
            vmem_limit_bytes=vmem_limit,
        ),
        cost_estimate=cost,
    )(tile_limits, x, n2, wp, bp)

    return out[:, :O]


def pool_avg_ref(x, n_wins, weight_t, bias):
    """Pure-JAX reference matching the PyTorch forward."""
    B, T, D = x.shape
    mask = jnp.arange(T)[None, :] < n_wins[:, None].astype(jnp.int32)
    xm = jnp.where(mask[:, :, None], x, 0.0)
    avg = xm.sum(axis=1) / n_wins[:, None]
    return avg @ weight_t + bias[None, :]


if __name__ == "__main__":
    # Shapes implied by the module: batch=2, time-windows (seq)=8,
    # d_input=32, output_size=16.
    B, T, D, O = 2, 8, 32, 16

    key = jax.random.PRNGKey(0)
    kx, kw, kb, kx2 = jax.random.split(key, 4)

    x = jax.random.normal(kx, (B, T, D), dtype=jnp.float32)
    n_wins = jnp.array([5.0, 8.0], dtype=jnp.float32)     # valid time-steps per row

    # Deterministic "Linear(d_input, output_size)" params (stored transposed).
    weight_t = jax.random.normal(kw, (D, O), dtype=jnp.float32) * 0.05
    bias = jax.random.normal(kb, (O,), dtype=jnp.float32) * 0.05

    out = jax.block_until_ready(pool_avg(x, n_wins, weight_t, bias))
    ref = pool_avg_ref(x, n_wins, weight_t, bias)
    assert out.shape == (B, O)
    assert jnp.allclose(out, ref, atol=2e-5, rtol=1e-5), "mismatch vs reference (small)"

    # Second config: ragged batch tiles (10 rows, tb=8), multi-step time
    # reduction with a ragged time tail (T=42, tt=8), and skipped
    # fully-masked time tiles in the second batch tile (max n there is 9).
    B2, T2 = 10, 42
    x2 = jax.random.normal(kx2, (B2, T2, D), dtype=jnp.float32)
    n_wins2 = jnp.array([42., 7., 13., 1., 40., 26., 8., 31., 5., 9.],
                        dtype=jnp.float32)
    out2 = jax.block_until_ready(pool_avg(x2, n_wins2, weight_t, bias, tb=8, tt=8))
    ref2 = pool_avg_ref(x2, n_wins2, weight_t, bias)
    assert out2.shape == (B2, O)
    assert jnp.allclose(out2, ref2, atol=2e-5, rtol=1e-5), "mismatch vs reference (grid)"

    # TODO(synk): the PyTorch module mutates x in place (masked_fill_); the JAX
    # kernel is functional and leaves the caller's x untouched.

    print("KERNEL_OK")
</pallas_src>

<mosaic_0001>
module attributes {stable_mosaic.version = 11 : i64} {
  func.func @pool_avg_kernel(%arg0: i32, %arg1: i32, %arg2: memref<1xi32, #tpu.memory_space<smem>>, %arg3: memref<2x8x32xf32, #tpu.memory_space<vmem>>, %arg4: memref<2x1xf32, #tpu.memory_space<vmem>>, %arg5: memref<32x128xf32, #tpu.memory_space<vmem>>, %arg6: memref<1x128xf32, #tpu.memory_space<vmem>>, %arg7: memref<2x128xf32, #tpu.memory_space<vmem>>, %arg8: memref<2x32xf32, #tpu.memory_space<vmem>>) attributes {dimension_semantics = [#tpu.dimension_semantics<parallel>, #tpu.dimension_semantics<arbitrary>], iteration_bounds = array<i64: 1, 1>, scalar_prefetch = 1 : i64, scratch_operands = 1 : i64, tpu.core_type = #tpu.core_type<tc>, window_params = [{transform_indices = @transform_0, window_bounds = array<i64: 2, 8, 32>}, {transform_indices = @transform_1, window_bounds = array<i64: 2, 1>}, {pipeline_mode = #tpu.pipeline_mode<synchronous>, transform_indices = @transform_2, window_bounds = array<i64: 32, 128>}, {pipeline_mode = #tpu.pipeline_mode<synchronous>, transform_indices = @transform_3, window_bounds = array<i64: 1, 128>}, {transform_indices = @transform_4, window_bounds = array<i64: 2, 128>}]} {
    %c0_i32 = arith.constant 0 : i32
    %0 = arith.cmpi eq, %arg1, %c0_i32 : i32
    %1 = arith.extui %0 : i1 to i32
    %c0_i32_0 = arith.constant 0 : i32
    %2 = arith.cmpi ne, %1, %c0_i32_0 : i32
    scf.if %2 {
      %cst = arith.constant 0.000000e+00 : f32
      %11 = vector.broadcast %cst : f32 to vector<2x32xf32>
      %c0 = arith.constant 0 : index
      %c0_4 = arith.constant 0 : index
      %12 = vector.load %arg8[%c0, %c0_4] : memref<2x32xf32, #tpu.memory_space<vmem>>, vector<2x32xf32>
      tpu.vector_store %arg8[%c0, %c0_4], %11 {strides = array<i32>} : memref<2x32xf32, #tpu.memory_space<vmem>>, vector<2x32xf32>,
    } else {
    }
    %3 = arith.index_cast %arg0 : i32 to index
    %4 = memref.load %arg2[%3] : memref<1xi32, #tpu.memory_space<smem>>
    %5 = arith.cmpi slt, %arg1, %4 : i32
    %6 = arith.extui %5 : i1 to i32
    %c0_i32_1 = arith.constant 0 : i32
    %7 = arith.cmpi ne, %6, %c0_i32_1 : i32
    scf.if %7 {
      %c0 = arith.constant 0 : index
      %c0_4 = arith.constant 0 : index
      %c0_5 = arith.constant 0 : index
      %11 = vector.load %arg3[%c0, %c0_4, %c0_5] : memref<2x8x32xf32, #tpu.memory_space<vmem>>, vector<2x8x32xf32>
      %c0_6 = arith.constant 0 : index
      %c0_7 = arith.constant 0 : index
      %12 = vector.load %arg4[%c0_6, %c0_7] : memref<2x1xf32, #tpu.memory_space<vmem>>, vector<2x1xf32>
      %13 = arith.fptosi %12 : vector<2x1xf32> to vector<2x1xi32>
      %c8_i32 = arith.constant 8 : i32
      %14 = vector.broadcast %c8_i32 : i32 to vector<2x1xi32>
      %15 = arith.minsi %13, %14 : vector<2x1xi32>
      %c8_i32_8 = arith.constant 8 : i32
      %16 = arith.muli %arg1, %c8_i32_8 : i32
      %17 = tpu.iota {dimensions = array<i32: 1>} : vector<2x8x1xi32>
      %18 = vector.broadcast %16 : i32 to vector<2x8x1xi32>
      %19 = arith.addi %18, %17 : vector<2x8x1xi32>
      %20 = vector.shape_cast %15 : vector<2x1xi32> to vector<2x1x1xi32>
      %21 = vector.broadcast %20 : vector<2x1x1xi32> to vector<2x8x1xi32>
      %22 = arith.cmpi slt, %19, %21 : vector<2x8x1xi32>
      %cst = arith.constant 0.000000e+00 : f32
      %23 = vector.broadcast %cst : f32 to vector<2x8x32xf32>
      %24 = vector.shape_cast %22 : vector<2x8x1xi1> to vector<2x8x1xi1>
      %25 = vector.broadcast %24 : vector<2x8x1xi1> to vector<2x8x32xi1>
      %26 = arith.select %25, %11, %23 : vector<2x8x32xi1>, vector<2x8x32xf32>
      %c0_9 = arith.constant 0 : index
      %c0_10 = arith.constant 0 : index
      %27 = vector.load %arg8[%c0_9, %c0_10] : memref<2x32xf32, #tpu.memory_space<vmem>>, vector<2x32xf32>
      %cst_11 = arith.constant dense<0.000000e+00> : vector<2x32xf32>
      %28 = vector.multi_reduction <add>, %26, %cst_11 [1] : vector<2x8x32xf32> to vector<2x32xf32>
      %29 = arith.addf %27, %28 : vector<2x32xf32>
      %c0_12 = arith.constant 0 : index
      %c0_13 = arith.constant 0 : index
      %30 = vector.load %arg8[%c0_12, %c0_13] : memref<2x32xf32, #tpu.memory_space<vmem>>, vector<2x32xf32>
      tpu.vector_store %arg8[%c0_12, %c0_13], %29 {strides = array<i32>} : memref<2x32xf32, #tpu.memory_space<vmem>>, vector<2x32xf32>,
    } else {
    }
    %c0_i32_2 = arith.constant 0 : i32
    %8 = arith.cmpi eq, %arg1, %c0_i32_2 : i32
    %9 = arith.extui %8 : i1 to i32
    %c0_i32_3 = arith.constant 0 : i32
    %10 = arith.cmpi ne, %9, %c0_i32_3 : i32
    scf.if %10 {
      %c0 = arith.constant 0 : index
      %c0_4 = arith.constant 0 : index
      %11 = vector.load %arg8[%c0, %c0_4] : memref<2x32xf32, #tpu.memory_space<vmem>>, vector<2x32xf32>
      %c0_5 = arith.constant 0 : index
      %c0_6 = arith.constant 0 : index
      %12 = vector.load %arg4[%c0_5, %c0_6] : memref<2x1xf32, #tpu.memory_space<vmem>>, vector<2x1xf32>
      %13 = vector.broadcast %12 : vector<2x1xf32> to vector<2x32xf32>
      %14 = arith.divf %11, %13 : vector<2x32xf32>
      %c0_7 = arith.constant 0 : index
      %c0_8 = arith.constant 0 : index
      %15 = vector.load %arg5[%c0_7, %c0_8] : memref<32x128xf32, #tpu.memory_space<vmem>>, vector<32x128xf32>
      %cst = arith.constant dense<0.000000e+00> : vector<2x128xf32>
      %16 = tpu.matmul %14, %15, %cst {dimension_numbers = #tpu.dot_dimension_numbers<[1], [0], [0], [1], [0, 0, 1, 1], [], []>} : vector<2x32xf32>, vector<32x128xf32>, vector<2x128xf32> -> vector<2x128xf32>
      %c0_9 = arith.constant 0 : index
      %c0_10 = arith.constant 0 : index
      %17 = vector.load %arg6[%c0_9, %c0_10] : memref<1x128xf32, #tpu.memory_space<vmem>>, vector<1x128xf32>
      %18 = vector.broadcast %17 : vector<1x128xf32> to vector<2x128xf32>
      %19 = arith.addf %16, %18 : vector<2x128xf32>
      %c0_11 = arith.constant 0 : index
      %c0_12 = arith.constant 0 : index
      %20 = vector.load %arg7[%c0_11, %c0_12] : memref<2x128xf32, #tpu.memory_space<vmem>>, vector<2x128xf32>
      tpu.vector_store %arg7[%c0_11, %c0_12], %19 {strides = array<i32>} : memref<2x128xf32, #tpu.memory_space<vmem>>, vector<2x128xf32>,
    } else {
    }
    return
  }
  func.func @transform_0(%arg0: i32, %arg1: i32, %arg2: memref<1xi32, #tpu.memory_space<smem>>) -> (i32, i32, i32) {
    %0 = arith.index_cast %arg0 : i32 to index
    %1 = memref.load %arg2[%0] : memref<1xi32, #tpu.memory_space<smem>>
    %c1_i32 = arith.constant 1 : i32
    %2 = arith.subi %1, %c1_i32 : i32
    %c0_i32 = arith.constant 0 : i32
    %3 = arith.maxsi %2, %c0_i32 : i32
    %4 = arith.minsi %arg1, %3 : i32
    %c0_i32_0 = arith.constant 0 : i32
    %c0_i32_1 = arith.constant 0 : i32
    return %arg0, %4, %c0_i32_0 : i32, i32, i32
  }
  func.func @transform_1(%arg0: i32, %arg1: i32, %arg2: memref<1xi32, #tpu.memory_space<smem>>) -> (i32, i32) {
    %c0_i32 = arith.constant 0 : i32
    %c0_i32_0 = arith.constant 0 : i32
    return %arg0, %c0_i32 : i32, i32
  }
  func.func @transform_2(%arg0: i32, %arg1: i32, %arg2: memref<1xi32, #tpu.memory_space<smem>>) -> (i32, i32) {
    %c0_i32 = arith.constant 0 : i32
    %c0_i32_0 = arith.constant 0 : i32
    %c0_i32_1 = arith.constant 0 : i32
    return %c0_i32, %c0_i32_0 : i32, i32
  }
  func.func @transform_3(%arg0: i32, %arg1: i32, %arg2: memref<1xi32, #tpu.memory_space<smem>>) -> (i32, i32) {
    %c0_i32 = arith.constant 0 : i32
    %c0_i32_0 = arith.constant 0 : i32
    %c0_i32_1 = arith.constant 0 : i32
    return %c0_i32, %c0_i32_0 : i32, i32
  }
  func.func @transform_4(%arg0: i32, %arg1: i32, %arg2: memref<1xi32, #tpu.memory_space<smem>>) -> (i32, i32) {
    %c0_i32 = arith.constant 0 : i32
    %c0_i32_0 = arith.constant 0 : i32
    return %arg0, %c0_i32 : i32, i32
  }
}

</mosaic_0001>

<bundles_post_ra>
// kernel: tpu_custom_call.1
= control target key start
LH: loop header
LB: loop body
LE: loop exit
PB: predicated region body
PF: predicated region fallthrough
CT: control target
= control target key end

     0   :  { %11 = vsyncpa [#allocation6], 0  ;;  %s385_s0 = inlined_call_operand.<no memory space> [shape: s32[1], index: 0, kind: input, shape index: {}]   ;;  %s386_s1 = inlined_call_operand.hbm [shape: f32[2,8,32], index: 1, kind: input, shape index: {}]   ;;  %s387_s2 = inlined_call_operand.vmem [shape: f32[2,1], index: 2, kind: input, shape index: {}]   ;;  %s388_s3 = inlined_call_operand.hbm [shape: f32[32,128], index: 3, kind: input, shape index: {}]   ;;  %s389_s4 = inlined_call_operand.vmem [shape: f32[1,128], index: 4, kind: input, shape index: {}]   ;;  %s390_s5 = inlined_call_operand.hbm [shape: f32[2,128], index: 5, kind: output, shape index: {}]  }
   0x1   :  { %12 = vsyncpa [#allocation9], 0 }
   0x2   :  { %13 = vsyncpa [#allocation7], 0  ;;  %s207_s20 = sadd.s32 4294967295, %s385_s0  ;;  %s312_s21 = smov [#allocation5]  }
   0x3   :  { %p18_p0 = scmp.gt.s32.totalorder %s207_s20, 0  ;;  %s353_s22 = sshll.u32 %s312_s21, 4  ;;  %s29_s22 = int_to_ptr.vmem [resolvable:$true] %s353_s22 }
   0x4   :  { %s41_s25 = sshll.u32 %s388_s3, 4  ;;  %s313_s27 = smov [#allocation8]   ;;  %s42_s25 = int_to_ptr.hbm [resolvable:$true] %s41_s25 }
   0x5   :  { %s392_s20 = smov (!%p18_p0, %s207_s20), 0  ;;  %s43_s28 = sshll.u32 %s313_s27, 4  ;;  %s44_s28 = int_to_ptr.vmem [resolvable:$true] %s43_s28 }
   0x6   :  { %s394_s20 = smov (%p18_p0, %s392_s20), 0  ;;  %s238_s3 = scalar_lea.hbm %s386_s1, 16 }
   0x7   :  { %s209_s26 = sshll.u32 %s394_s20, 3 }
   0x8   :  { %s25_s6 = scalar_lea.hbm %s386_s1, %s209_s26 }
   0x9   :  { %s26_s7 = sshll.u32 %s25_s6, 4  ;;  %s27_s7 = int_to_ptr.hbm [resolvable:$true] %s26_s7 }
   0xa   :  { %s234_s8 = sshra.s32 %s27_s7, 4  ;;  %s235_s8 = int_to_ptr.hbm [resolvable:$true] %s234_s8 }
   0xb   :  { %s236_s9 = scalar_lea.hbm %s235_s8, 16  ;;  %p239_p2 = scmp.lt.s32.totalorder %s235_s8, %s386_s1 }
   0xc   :  { %p237_p1 = scmp.ne.s32.totalorder %s235_s8, %s236_s9  ;;  %p240_p3 = scmp.lt.s32.totalorder %s238_s3, %s236_s9 }
   0xe   :  { %p241_p4 = por %p240_p3, %p239_p2 }
  0x10   :  { %p242_p5 = pnand %p241_p4, %p237_p1 }
  0x12   :  { %245 = shalt.err (!%p242_p5)
}
  0x13   :  { %s314_s14 = smov 128   ;;  %s315_s15 = smov 8  }
  0x14   :  { %34 = dma.hbm_to_vmem [thread:$0]  %s27_s7, 256, %s29_s22, [#allocation6], %s314_s14, %s314_s14, %s315_s15  }
  0x15   :  { %49 = dma.hbm_to_vmem [thread:$0]  %s42_s25, 512, %s44_s28, [#allocation9], %s314_s14, %s314_s14, %s315_s15  }
  0x16   :  { %306 = dma.done.wait [#allocation6], 256  }
  0x17   :  { %307 = vsyncadd [#allocation6], 4294967040 }
  0x18   :  { %308 = dma.done.wait [#allocation9], 512  }
  0x19   :  { %309 = vsyncadd [#allocation9], 4294966784  ;;  %vm70_vm0 = vcmask 254976   ;;  %v316_v0 = vmov 0.0   ;;  %p211_p6 = scmp.le.s32.totalorder %s385_s0, 0 }
  0x1a   :  { %71 = vst.msk [vmem:[#allocation2] sm:$0x3] %vm70_vm0, %v316_v0 }
  0x1b   :  { %76 = sbr.rel (%p211_p6) target bundleno = 186 (0xba), region = 33 }
  0x20   :  { %v79_v1 = vld [vmem:[%s387_s2] sm:$0x3]  ;;  %v317_v2 = vmov 0   ;;  %v84_v5 = vlaneseq  ;;  %v77_v15 = vld [vmem:[#allocation5] sm:$0xff]  ;;  %vm106_vm5 = vcmask 261120   ;;  %v78_v21 = vld [vmem:[#allocation5 + $0x8] sm:$0xff] }
  0x21   :  { %229 = vset.pattern.permute.xlu0 %v317_v2  ;;  %vm216_vm1 = vcmp.lt.s32.totalorder %v79_v1, 0  ;;  %v217_v3 = vceil.f32 %v79_v1  ;;  %v218_v4 = vfloor.f32 %v79_v1  ;;  %vm123_vm8 = vcmask 1041409   ;;  %v105_v34 = vld [vmem:[#allocation2] sm:$0x3] }
  0x22   :  { %v85_v8 = vshrl.u32 %v84_v5, 7 }
  0x23   :  { %v219_v6 = vsel %vm216_vm1, %v217_v3, %v218_v4 }
  0x24   :  { %v220_v7 = vcvt.f32.s32 %v219_v6 }
  0x26   :  { %vm81_vm2 = vcmp.lt.s32.totalorder %v220_v7, 8 }
  0x27   :  { %v82_v9 = vsel %vm81_vm2, %v220_v7, 8 }
  0x28   :  { %v89_v10 = vperm.slane %v82_v9, 0  ;;  %v88_v11 = vrot.slane %v82_v9, 1 }
  0x2a   :  { %vm91_vm3 = vcmp.lt.s32.totalorder %v85_v8, %v89_v10  ;;  %v90_v12 = vperm.slane %v88_v11, 0 }
  0x2b   :  { %v93_v13 = vsel %vm91_vm3, 1, %v317_v2 }
  0x2c   :  { %96 = vperm.xlu0 %229, %v93_v13   ;;  %vm92_vm4 = vcmp.lt.s32.totalorder %v85_v8, %v90_v12 }
  0x2d   :  { %v94_v14 = vsel %vm92_vm4, 1, %v317_v2 }
  0x34   :  { %99 = vperm.xlu0 %229, %v94_v14  }
  0x9e   :  { %v97_v16 = vpop.permute.xlu0 %96 }
  0x9f   :  { %vm101_vm6 = vcmp.eq.s32.totalorder %v97_v16, 1 }
  0xa0   :  { %v103_v17 = vsel %vm101_vm6, %v77_v15, 0.0 }
  0xa1   :  { %v107_v18 = vsel %vm106_vm5, %v103_v17, 0.0 }
  0xa2   :  { %v108_v19 = vrot.slane %v107_v18, 4 }
  0xa4   :  { %v109_v20 = vadd.f32 %v108_v19, %v107_v18 }
  0xa6   :  { %v100_v22 = vpop.permute.xlu0 %99  ;;  %v110_v23 = vrot.slane %v109_v20, 2 }
  0xa7   :  { %vm102_vm7 = vcmp.eq.s32.totalorder %v100_v22, 1 }
  0xa8   :  { %v104_v24 = vsel %vm102_vm7, %v78_v21, 0.0  ;;  %v111_v27 = vadd.f32 %v110_v23, %v109_v20 }
  0xa9   :  { %v114_v25 = vsel %vm106_vm5, %v104_v24, 0.0 }
  0xaa   :  { %v115_v26 = vrot.slane %v114_v25, 4  ;;  %v112_v30 = vrot.slane %v111_v27, 1 }
  0xac   :  { %v116_v28 = vadd.f32 %v115_v26, %v114_v25  ;;  %v113_v33 = vadd.f32 %v112_v30, %v111_v27 }
  0xae   :  { %v117_v29 = vrot.slane %v116_v28, 2 }
  0xb0   :  { %v118_v31 = vadd.f32 %v117_v29, %v116_v28 }
  0xb2   :  { %v119_v32 = vrot.slane %v118_v31, 1 }
  0xb4   :  { %v120_v35 = vadd.f32 %v119_v32, %v118_v31 }
  0xb6   :  { %v124_v36 = vsel %vm123_vm8, %v120_v35, %v113_v33 }
  0xb7   :  { %v126_v37 = vadd.f32 %v124_v36, %v105_v34 }
  0xb9   :  { %128 = vst.msk [vmem:[#allocation2] sm:$0x3] %vm70_vm0, %v126_v37 }
  0xba PF:  { %v133_v38 = vld [vmem:[%s387_s2] sm:$0x3]  ;;  %v318_v39 = vmov 0   ;;  %v157_v40 = vld [vmem:[#allocation8 + $0x18] sm:$0xff]  ;;  %v156_v41 = vld [vmem:[#allocation8 + $0x10] sm:$0xff]  ;;  %vm162_vm13 = vcmask 261120  }
  0xbb   :  { %230 = vset.pattern.permute.xlu0 %v318_v39  ;;  %178 = vmatpush.msra.mxu0 %v157_v40  ;;  %v155_v42 = vld [vmem:[#allocation8 + $0x8] sm:$0xff]  ;;  %v154_v43 = vld [vmem:[#allocation8] sm:$0xff]  ;;  %s319_s21 = smov [#allocation10]   ;;  %s194_s25 = sshll.u32 %s390_s5, 4  ;;  %s195_s25 = int_to_ptr.hbm [resolvable:$true] %s194_s25 }
  0xbc   :  { %136 = vperm.xlu0 %230, %v133_v38   ;;  %v231_v57 = vld [vmem:[%s389_s4] ss:$0 sm:$0xff]  ;;  %s192_s22 = sshll.u32 %s319_s21, 4  ;;  %s193_s22 = int_to_ptr.vmem [resolvable:$true] %s192_s22 }
  0xbd   :  { %179 = vmatpush.msra.mxu0 %v156_v41 }
  0xbf   :  { %180 = vmatpush.msra.mxu0 %v155_v42 }
  0xc0   :  { %v132_v53 = vld [vmem:[#allocation2] sm:$0x3] }
  0xc1   :  { %181 = vmatpush.msra.mxu0 %v154_v43 }
 0x12e   :  { %v137_v44 = vpop.permute.xlu0 %136 }
 0x12f   :  { %232 = vrcp.f32 %v137_v44  ;;  %v150_v48 = vand.u32 2147483648, %v137_v44  ;;  %v148_v50 = vand.u32 2147483647, %v137_v44  ;;  %vm144_vm10 = vweird.f32 %v137_v44 }
 0x131   :  { %v151_v52 = vor.u32 1.1754944e-38, %v150_v48  ;;  %vm149_vm12 = vcmp.eq.f32.partialorder %v148_v50, 8.507059e+37 }
 0x135   :  { %v233_v45 = vpop.eup %232 }
 0x136   :  { %v140_v46 = vmul.f32 %v233_v45, %v137_v44  ;;  %vm145_vm9 = vweird.f32 %v233_v45 }
 0x137   :  { %vm146_vm11 = vmor %vm144_vm10, %vm145_vm9 }
 0x138   :  { %v141_v47 = vsub.f32 1.0, %v140_v46 }
 0x13a   :  { %v142_v49 = vmul.f32 %v233_v45, %v141_v47 }
 0x13c   :  { %v143_v51 = vadd.f32 %v233_v45, %v142_v49 }
 0x13e   :  { %v147_v54 = vsel %vm146_vm11, %v233_v45, %v143_v51 }
 0x13f   :  { %v152_v55 = vsel %vm149_vm12, %v151_v52, %v147_v54 }
 0x140   :  { %v153_v56 = vmul.f32 %v152_v55, %v132_v53 }
 0x142   :  { %212 = vmatmul.msk.f32.vlgmr.msra.gmra.mxu0 %vm162_vm13, %v153_v56 }
 0x1bf   :  { %v183_v58 = vpop.f32.mrf.mxu0 }
 0x1c0   :  { %v184_v59 = vadd.f32 %v231_v57, %v183_v58 }
 0x1c2   :  { %186 = vst [vmem:[#allocation10] sm:$0x3] %v184_v59 }
 0x1c3   :  { %197 = dma.vmem_to_hbm [thread:$0]  %s193_s22, 32, %s195_s25, [#allocation7]  }
 0x1c4   :  { %310 = dma.done.wait [#allocation7], 32  }
 0x1c5   :  { %311 = vsyncadd [#allocation7], 4294967264 }
 0x1c6   :  { %202 = vsyncpa [#allocation6], 1 }
 0x1c7   :  { %203 = vsyncpa [#allocation9], 1 }
 0x1c8   :  { %204 = vsyncpa [#allocation7], 1 }

</bundles_post_ra>
